<compile_context>
chip_gen: v6e
topology: v6e:2x2x1
jax: 0.10.0
libtpu: 0.0.40
codegen_flags: <defaults>
</compile_context>

<pallas_src>
import functools

import jax
import jax.numpy as jnp
from jax.experimental import pallas as pl
from jax.experimental.pallas import tpu as pltpu


# ---------------------------------------------------------------------------
# Kernel
# ---------------------------------------------------------------------------

def _pile_conv_kernel(*refs, bb, C, num_out, n_total, tile_n, with_mid,
                      with_dist):
    """One (batch-block g, N-tile t) grid step."""
    idx = 0
    x_ref = refs[idx]; idx += 1                       # (bb, C, tile_n) compute dtype
    dw_ref = None
    if with_dist:
        dw_ref = refs[idx]; idx += 1                  # (bb, C, tile_n)
    w_in_ref = refs[idx]; c_in_ref = refs[idx + 1]; idx += 2      # (2C, C), (1, 2C)
    if with_mid:
        w_mid_ref = refs[idx]; c_mid_ref = refs[idx + 1]; idx += 2  # (2C, C//2), (1, C//2)
    w_ox_ref = refs[idx]; w_of_ref = refs[idx + 1]; c_out_ref = refs[idx + 2]
    idx += 3                                          # (out_dim, C), (feat, out_dim), (1, out_dim)
    o_ref = refs[idx]; idx += 1                       # (bb, out_dim, num_out) f32, resident over t
    feat_ref = refs[idx]                              # scratch (bb, 2C) f32 running max

    t = pl.program_id(1)
    n_t = pl.num_programs(1)
    two_c = 2 * C
    out_dim = o_ref.shape[1]

    # ---- tile 0: init the running max and seed o_ref with the conv_out x-part
    # (uses the *unscaled* x, exactly as in the PyTorch module).
    @pl.when(t == 0)
    def _():
        feat_ref[...] = jnp.full(feat_ref.shape, -jnp.inf, dtype=feat_ref.dtype)
        w_ox_b = jnp.broadcast_to(w_ox_ref[...], (bb, out_dim, C))
        x0 = x_ref[:, :, :num_out]                    # num_out <= tile_n by construction
        o_ref[...] = jnp.einsum('boc,bcn->bon', w_ox_b, x0,
                                preferred_element_type=jnp.float32)

    # ---- every tile: conv_in matmul + running channel-wise max over N.
    # BN bias and the (monotone) ReLU commute with the max, so they are applied
    # once per (batch, channel) at the last tile instead of once per point.
    x_t = x_ref[...]
    if with_dist:
        x_t = x_t * dw_ref[...]                       # dist_w fused on the fresh tile
    w_in_b = jnp.broadcast_to(w_in_ref[...], (bb, two_c, C))
    y = jnp.einsum('boc,bcn->bon', w_in_b, x_t,
                   preferred_element_type=jnp.float32)            # (bb, 2C, tile_n)
    if n_total % tile_n != 0:
        # Ragged last tile: Pallas-padded columns hold unspecified data -> mask.
        col = t * tile_n + jax.lax.broadcasted_iota(jnp.int32, (1, 1, tile_n), 2)
        y = jnp.where(col < n_total, y, -jnp.inf)
    feat_ref[...] = jnp.maximum(feat_ref[...], jnp.max(y, axis=2))

    # ---- last tile: finish the global feature, fuse it into conv_out, ReLU.
    @pl.when(t == n_t - 1)
    def _():
        feat = feat_ref[...] + c_in_ref[...]                      # (bb, 2C)
        if with_mid:
            feat = jnp.maximum(feat, 0.0)                         # conv_in ReLU
            feat = jnp.dot(feat, w_mid_ref[...],
                           preferred_element_type=jnp.float32) + c_mid_ref[...]
            feat = jnp.maximum(feat, 0.0)                         # conv_mid ReLU
        ofs = jnp.dot(feat, w_of_ref[...],
                      preferred_element_type=jnp.float32) + c_out_ref[...]  # (bb, out_dim)
        o_ref[...] = jnp.maximum(o_ref[...] + ofs[:, :, None], 0.0
                                 ).astype(o_ref.dtype)


# ---------------------------------------------------------------------------
# Wrapper
# ---------------------------------------------------------------------------

def _round_up(x, m):
    return ((x + m - 1) // m) * m


def _rep_spec(arr):
    zeros = (0,) * arr.ndim
    return pl.BlockSpec(arr.shape, lambda g, t, _z=zeros: _z)


def _choose_blocks(B, C, N, num_out, out_dim, feat_dim, with_dist, use_bf16,
                   block_b, tile_n):
    """Pick (batch block, N tile, stored num_out, vmem limit) per TPU generation."""
    vmem_cap = 64 * 1024 * 1024                   # conservative fallback (v7x physical)
    try:
        vmem_cap = int(pltpu.get_tpu_info().vmem_capacity_bytes)
    except Exception:
        pass
    cores = 1
    try:
        dev = jax.devices()[0]
        for attr in ("num_cores", "core_count"):
            v = getattr(dev, attr, None)
            if v:
                cores = int(v)
                break
        else:
            kind = str(getattr(dev, "device_kind", "")).lower()
            if any(tag in kind for tag in ("v4", "v5p", "v7", "7x")):
                cores = 2
    except Exception:
        pass

    item = 2 if use_bf16 else 4
    c_pad = _round_up(C, 16 if use_bf16 else 8)   # VMEM sublane padding of a (C, tn) slab

    # --- N tile: full N when small, else ~512 lanes (>= num_out, 128-aligned).
    if tile_n is None:
        if N <= 2048:
            tn = N
        else:
            tn = max(512, _round_up(num_out, 128))
            if 2 * tn > N:
                tn = N
    else:
        tn = max(min(int(tile_n), N), num_out)
        if tn < N:
            tn = min(_round_up(tn, 128), N)

    # Lane-dense output stores: pad num_out up to a multiple of 128 when the
    # first N tile can supply the extra (discarded) columns.
    if num_out % 128 != 0 and _round_up(num_out, 128) <= tn:
        num_out_store = _round_up(num_out, 128)
    else:
        num_out_store = num_out

    # --- batch block: fill a per-generation VMEM budget (with headroom).
    budget = vmem_cap // 3
    fixed = 2 * 4 * (2 * C * C + C * out_dim + 2 * C * feat_dim
                     + feat_dim * out_dim + 4 * C + 2 * out_dim)
    per_b = (2 * c_pad * tn * item * (2 if with_dist else 1)  # x (+dist), double buffered
             + 2 * out_dim * num_out_store * 4                # output block, double buffered
             + 2 * C * tn * 4                                 # f32 conv_in intermediate
             + (2 * C + out_dim) * C * item                   # broadcast weight copies
             + out_dim * num_out_store * 4                    # x-part f32 temp
             + c_pad * num_out_store * item                   # x[:, :num_out] slice copy
             + 2 * C * 8)                                     # feat scratch / misc
    bb = max(1, min(B, (budget - fixed) // max(per_b, 1)))
    if block_b is not None:
        bb = max(1, min(int(block_b), B, 2 * bb))             # guard manual picks vs VMEM
    else:
        if cores > 1 and B >= 2 * cores:
            bb = min(bb, max(1, B // (2 * cores)))            # >=2 steps per TensorCore
        if B % bb:                                            # prefer a divisor of B
            for d in range(bb, 0, -1):
                if B % d == 0 and 4 * d >= 3 * bb:
                    bb = d
                    break
    return bb, tn, num_out_store, vmem_cap // 2


def pile_conv_forward(x, params, num_out, with_mid=True, dist_w=None,
                      use_bf16=True, block_b=None, tile_n=None):
    """PileConv forward (inference).  x: (B, C, N) -> (B, output_dim, num_out)."""
    B, C, N = x.shape
    assert num_out <= N, f"num_out ({num_out}) must be <= N ({N})"

    p_in, p_mid, p_out = params
    w_in, a_in, c_in = p_in
    w_out, a_out, c_out = p_out
    out_dim = w_out.shape[0]
    feat_dim = w_out.shape[1] - C
    with_dist = dist_w is not None
    cdt = jnp.bfloat16 if use_bf16 else jnp.float32

    # Fold the BN scale (gamma/sqrt(var+eps), combined in `a`) into the conv
    # weights; the per-channel shifts stay as f32 rows applied after the max.
    w_in_s = (a_in[:, None] * w_in).astype(cdt)                      # (2C, C)
    c_in_row = c_in[None, :].astype(jnp.float32)                     # (1, 2C)
    w_ox = (a_out[:, None] * w_out[:, :C]).astype(cdt)               # (out_dim, C)
    w_of_t = (a_out[:, None] * w_out[:, C:]).T.astype(jnp.float32)   # (feat_dim, out_dim)
    c_out_row = c_out[None, :].astype(jnp.float32)                   # (1, out_dim)
    if with_mid:
        w_mid, a_mid, c_mid = p_mid
        w_mid_t = (a_mid[:, None] * w_mid).T.astype(jnp.float32)     # (2C, C//2)
        c_mid_row = c_mid[None, :].astype(jnp.float32)               # (1, C//2)

    bb, tn, num_out_store, vmem_limit = _choose_blocks(
        B, C, N, num_out, out_dim, feat_dim, with_dist, use_bf16, block_b, tile_n)
    n_tiles = pl.cdiv(N, tn)
    n_bsteps = pl.cdiv(B, bb)
    B_pad = n_bsteps * bb

    x_k = x.astype(cdt)
    dw_k = dist_w[:, :, :N].astype(cdt) if with_dist else None
    if B_pad != B:
        pad = ((0, B_pad - B), (0, 0), (0, 0))
        x_k = jnp.pad(x_k, pad)
        if with_dist:
            dw_k = jnp.pad(dw_k, pad)

    args = [x_k]
    in_specs = [pl.BlockSpec((bb, C, tn), lambda g, t: (g, 0, t))]
    if with_dist:
        args.append(dw_k)
        in_specs.append(pl.BlockSpec((bb, C, tn), lambda g, t: (g, 0, t)))
    small = [w_in_s, c_in_row]
    if with_mid:
        small += [w_mid_t, c_mid_row]
    small += [w_ox, w_of_t, c_out_row]
    args += small
    in_specs += [_rep_spec(a) for a in small]

    # Cost hint (padded batch, includes the dist multiply / reductions / ReLUs).
    flops = B_pad * (2 * (2 * C) * C * N
                     + (C * N if with_dist else 0)
                     + 2 * out_dim * C * num_out_store
                     + (2 * feat_dim * 2 * C if with_mid else 0)
                     + 2 * out_dim * feat_dim
                     + 2 * C * N + out_dim * num_out_store)
    bytes_accessed = (int(x_k.size) * x_k.dtype.itemsize
                      + (int(dw_k.size) * dw_k.dtype.itemsize if with_dist else 0)
                      + B_pad * out_dim * num_out_store * 4
                      + sum(int(a.size) * a.dtype.itemsize for a in small))

    out = pl.pallas_call(
        functools.partial(_pile_conv_kernel, bb=bb, C=C, num_out=num_out_store,
                          n_total=N, tile_n=tn, with_mid=with_mid,
                          with_dist=with_dist),
        out_shape=jax.ShapeDtypeStruct((B_pad, out_dim, num_out_store), jnp.float32),
        grid=(n_bsteps, n_tiles),
        in_specs=in_specs,
        out_specs=pl.BlockSpec((bb, out_dim, num_out_store), lambda g, t: (g, 0, 0)),
        scratch_shapes=[pltpu.VMEM((bb, 2 * C), jnp.float32)],
        compiler_params=pltpu.CompilerParams(
            dimension_semantics=("parallel", "arbitrary"),
            vmem_limit_bytes=int(vmem_limit)),
        cost_estimate=pl.CostEstimate(flops=int(flops), transcendentals=0,
                                      bytes_accessed=int(bytes_accessed)),
    )(*args)

    if B_pad != B or num_out_store != num_out:
        out = out[:B, :, :num_out]
    return out


# ---------------- parameter setup (plain JAX glue) ----------------

def init_conv1d_params(key, cin, cout):
    """Deterministic Conv1d(k=1) + BatchNorm1d parameters."""
    kw, kb, kg, kbe, km, kv = jax.random.split(key, 6)
    w = 0.1 * jax.random.normal(kw, (cout, cin), jnp.float32)
    b = 0.1 * jax.random.normal(kb, (cout,), jnp.float32)
    gamma = 1.0 + 0.1 * jax.random.normal(kg, (cout,), jnp.float32)
    beta = 0.1 * jax.random.normal(kbe, (cout,), jnp.float32)
    mean = 0.1 * jax.random.normal(km, (cout,), jnp.float32)
    var = 1.0 + jnp.abs(jax.random.normal(kv, (cout,), jnp.float32))
    return w, b, gamma, beta, mean, var


def fold_bn(w, b, gamma, beta, mean, var, eps=1e-5):
    """Fold inference-mode BN (and conv bias) into per-channel affine (a, c)."""
    # TODO(synk): BatchNorm train-mode running-stat updates are not implemented;
    # this matches the PyTorch module in eval() mode only.
    scale = gamma / jnp.sqrt(var + eps)
    return w, scale, beta - mean * scale + scale * b


# ---------------- pure-JAX reference for verification ----------------

def pile_conv_ref(x, params, num_out, with_mid=True, dist_w=None):
    (w_in, a_in, c_in), p_mid, (w_out, a_out, c_out) = params
    B, C, N = x.shape

    def conv_bn(h, w, a, c, relu):
        y = jnp.einsum('oc,bcn->bon', w, h)
        y = y * a[None, :, None] + c[None, :, None]
        return jnp.maximum(y, 0.0) if relu else y

    x_in = x * dist_w[:, :, :N] if dist_w is not None else x
    y = conv_bn(x_in, w_in, a_in, c_in, relu=with_mid)
    feat = jnp.max(y, axis=2, keepdims=True)
    if with_mid:
        w_mid, a_mid, c_mid = p_mid
        feat = conv_bn(feat, w_mid, a_mid, c_mid, relu=True)
    cat = jnp.concatenate(
        [x[:, :, :num_out], jnp.repeat(feat, num_out, axis=2)], axis=1)
    return conv_bn(cat, w_out, a_out, c_out, relu=True)


if __name__ == "__main__":
    key = jax.random.PRNGKey(0)
    B, C, N = 2, 4, 16            # input_dim = 4
    num_out = 8
    output_dim = 8
    with_mid = True

    k_x, k_dw, k_in, k_mid, k_out, k_out_nm = jax.random.split(key, 6)
    x = jax.random.normal(k_x, (B, C, N), jnp.float32)
    dist_w = jax.random.uniform(k_dw, (B, C, N), jnp.float32, minval=0.5, maxval=1.5)

    p_in = fold_bn(*init_conv1d_params(k_in, C, 2 * C))                   # conv_in
    p_mid = fold_bn(*init_conv1d_params(k_mid, 2 * C, C // 2))            # conv_mid
    p_out = fold_bn(*init_conv1d_params(k_out, C + C // 2, output_dim))   # conv_out
    params = (p_in, p_mid, p_out)

    ref = pile_conv_ref(x, params, num_out=num_out, with_mid=with_mid)

    # f32 path (tight tolerance).
    out = jax.block_until_ready(
        pile_conv_forward(x, params, num_out=num_out, with_mid=with_mid,
                          use_bf16=False))
    assert out.shape == (B, output_dim, num_out), out.shape
    assert jnp.allclose(out, ref, atol=1e-4, rtol=1e-4), "mismatch (f32)"

    # f32 path with dist_w fused in-kernel.
    out_dw = jax.block_until_ready(
        pile_conv_forward(x, params, num_out=num_out, with_mid=with_mid,
                          dist_w=dist_w, use_bf16=False))
    ref_dw = pile_conv_ref(x, params, num_out=num_out, with_mid=with_mid,
                           dist_w=dist_w)
    assert jnp.allclose(out_dw, ref_dw, atol=1e-4, rtol=1e-4), "mismatch (dist_w)"

    # with_mid=False branch.
    p_out_nm = fold_bn(*init_conv1d_params(k_out_nm, C + 2 * C, output_dim))
    params_nm = (p_in, None, p_out_nm)
    out_nm = jax.block_until_ready(
        pile_conv_forward(x, params_nm, num_out=num_out, with_mid=False,
                          use_bf16=False))
    ref_nm = pile_conv_ref(x, params_nm, num_out=num_out, with_mid=False)
    assert jnp.allclose(out_nm, ref_nm, atol=1e-4, rtol=1e-4), "mismatch (no mid)"

    # Default bf16 MXU path (f32 accumulation) — looser tolerance.
    out_bf = jax.block_until_ready(
        pile_conv_forward(x, params, num_out=num_out, with_mid=with_mid))
    assert jnp.allclose(out_bf, ref, atol=3e-2, rtol=3e-2), "mismatch (bf16)"

    # N-tiled path (running-max scratch, ragged last tile, batch padding).
    N2 = 300
    x2 = jax.random.normal(jax.random.PRNGKey(1), (3, C, N2), jnp.float32)
    out_t = jax.block_until_ready(
        pile_conv_forward(x2, params, num_out=num_out, with_mid=with_mid,
                          use_bf16=False, tile_n=128, block_b=2))
    ref_t = pile_conv_ref(x2, params, num_out=num_out, with_mid=with_mid)
    assert out_t.shape == (3, output_dim, num_out), out_t.shape
    assert jnp.allclose(out_t, ref_t, atol=1e-4, rtol=1e-4), "mismatch (tiled N)"

    print("KERNEL_OK")
</pallas_src>

<mosaic_0001>
module attributes {stable_mosaic.version = 11 : i64} {
  func.func @_pile_conv_kernel(%arg0: i32, %arg1: i32, %arg2: memref<2x4x16xf32, #tpu.memory_space<vmem>>, %arg3: memref<8x4xf32, #tpu.memory_space<vmem>>, %arg4: memref<1x8xf32, #tpu.memory_space<vmem>>, %arg5: memref<8x2xf32, #tpu.memory_space<vmem>>, %arg6: memref<1x2xf32, #tpu.memory_space<vmem>>, %arg7: memref<8x4xf32, #tpu.memory_space<vmem>>, %arg8: memref<2x8xf32, #tpu.memory_space<vmem>>, %arg9: memref<1x8xf32, #tpu.memory_space<vmem>>, %arg10: memref<2x8x8xf32, #tpu.memory_space<vmem>>, %arg11: memref<2x8xf32, #tpu.memory_space<vmem>>) attributes {dimension_semantics = [#tpu.dimension_semantics<parallel>, #tpu.dimension_semantics<arbitrary>], iteration_bounds = array<i64: 1, 1>, scalar_prefetch = 0 : i64, scratch_operands = 1 : i64, tpu.core_type = #tpu.core_type<tc>, window_params = [{transform_indices = @transform_0, window_bounds = array<i64: 2, 4, 16>}, {pipeline_mode = #tpu.pipeline_mode<synchronous>, transform_indices = @transform_1, window_bounds = array<i64: 8, 4>}, {pipeline_mode = #tpu.pipeline_mode<synchronous>, transform_indices = @transform_2, window_bounds = array<i64: 1, 8>}, {pipeline_mode = #tpu.pipeline_mode<synchronous>, transform_indices = @transform_3, window_bounds = array<i64: 8, 2>}, {pipeline_mode = #tpu.pipeline_mode<synchronous>, transform_indices = @transform_4, window_bounds = array<i64: 1, 2>}, {pipeline_mode = #tpu.pipeline_mode<synchronous>, transform_indices = @transform_5, window_bounds = array<i64: 8, 4>}, {pipeline_mode = #tpu.pipeline_mode<synchronous>, transform_indices = @transform_6, window_bounds = array<i64: 2, 8>}, {pipeline_mode = #tpu.pipeline_mode<synchronous>, transform_indices = @transform_7, window_bounds = array<i64: 1, 8>}, {transform_indices = @transform_8, window_bounds = array<i64: 2, 8, 8>}]} {
    %c0_i32 = arith.constant 0 : i32
    %0 = arith.cmpi eq, %arg1, %c0_i32 : i32
    %1 = arith.extui %0 : i1 to i32
    %c0_i32_0 = arith.constant 0 : i32
    %2 = arith.cmpi ne, %1, %c0_i32_0 : i32
    scf.if %2 {
      %cst_12 = arith.constant 0xFF800000 : f32
      %15 = vector.broadcast %cst_12 : f32 to vector<2x8xf32>
      %c0_13 = arith.constant 0 : index
      %c0_14 = arith.constant 0 : index
      %16 = vector.load %arg11[%c0_13, %c0_14] : memref<2x8xf32, #tpu.memory_space<vmem>>, vector<2x8xf32>
      tpu.vector_store %arg11[%c0_13, %c0_14], %15 {strides = array<i32>} : memref<2x8xf32, #tpu.memory_space<vmem>>, vector<2x8xf32>,
      %c0_15 = arith.constant 0 : index
      %c0_16 = arith.constant 0 : index
      %17 = vector.load %arg7[%c0_15, %c0_16] : memref<8x4xf32, #tpu.memory_space<vmem>>, vector<8x4xf32>
      %18 = vector.shape_cast %17 : vector<8x4xf32> to vector<1x8x4xf32>
      %19 = vector.broadcast %18 : vector<1x8x4xf32> to vector<2x8x4xf32>
      %c0_17 = arith.constant 0 : index
      %c0_18 = arith.constant 0 : index
      %c0_19 = arith.constant 0 : index
      %20 = vector.load %arg2[%c0_17, %c0_18, %c0_19] : memref<2x4x16xf32, #tpu.memory_space<vmem>>, vector<2x4x8xf32>
      "tpu.trace_start"() <{level = 10 : i32, message = "boc,bcn->bon"}> : () -> ()
      %cst_20 = arith.constant dense<0.000000e+00> : vector<2x8x8xf32>
      %21 = tpu.matmul %19, %20, %cst_20 {dimension_numbers = #tpu.dot_dimension_numbers<[2], [1], [1], [2], [0, 0, 0, 1, 1, 2], [0], [0]>} : vector<2x8x4xf32>, vector<2x4x8xf32>, vector<2x8x8xf32> -> vector<2x8x8xf32>
      "tpu.trace_stop"() : () -> ()
      %c0_21 = arith.constant 0 : index
      %c0_22 = arith.constant 0 : index
      %c0_23 = arith.constant 0 : index
      %22 = vector.load %arg10[%c0_21, %c0_22, %c0_23] : memref<2x8x8xf32, #tpu.memory_space<vmem>>, vector<2x8x8xf32>
      tpu.vector_store %arg10[%c0_21, %c0_22, %c0_23], %21 {strides = array<i32>} : memref<2x8x8xf32, #tpu.memory_space<vmem>>, vector<2x8x8xf32>,
    } else {
    }
    %c0 = arith.constant 0 : index
    %c0_1 = arith.constant 0 : index
    %c0_2 = arith.constant 0 : index
    %3 = vector.load %arg2[%c0, %c0_1, %c0_2] : memref<2x4x16xf32, #tpu.memory_space<vmem>>, vector<2x4x16xf32>
    %c0_3 = arith.constant 0 : index
    %c0_4 = arith.constant 0 : index
    %4 = vector.load %arg3[%c0_3, %c0_4] : memref<8x4xf32, #tpu.memory_space<vmem>>, vector<8x4xf32>
    %5 = vector.shape_cast %4 : vector<8x4xf32> to vector<1x8x4xf32>
    %6 = vector.broadcast %5 : vector<1x8x4xf32> to vector<2x8x4xf32>
    "tpu.trace_start"() <{level = 10 : i32, message = "boc,bcn->bon"}> : () -> ()
    %cst = arith.constant dense<0.000000e+00> : vector<2x8x16xf32>
    %7 = tpu.matmul %6, %3, %cst {dimension_numbers = #tpu.dot_dimension_numbers<[2], [1], [1], [2], [0, 0, 0, 1, 1, 2], [0], [0]>} : vector<2x8x4xf32>, vector<2x4x16xf32>, vector<2x8x16xf32> -> vector<2x8x16xf32>
    "tpu.trace_stop"() : () -> ()
    %c0_5 = arith.constant 0 : index
    %c0_6 = arith.constant 0 : index
    %8 = vector.load %arg11[%c0_5, %c0_6] : memref<2x8xf32, #tpu.memory_space<vmem>>, vector<2x8xf32>
    %cst_7 = arith.constant dense<0xFF800000> : vector<2x8xf32>
    %9 = vector.multi_reduction <maximumf>, %7, %cst_7 [2] : vector<2x8x16xf32> to vector<2x8xf32>
    %10 = arith.maximumf %8, %9 : vector<2x8xf32>
    %c0_8 = arith.constant 0 : index
    %c0_9 = arith.constant 0 : index
    %11 = vector.load %arg11[%c0_8, %c0_9] : memref<2x8xf32, #tpu.memory_space<vmem>>, vector<2x8xf32>
    tpu.vector_store %arg11[%c0_8, %c0_9], %10 {strides = array<i32>} : memref<2x8xf32, #tpu.memory_space<vmem>>, vector<2x8xf32>,
    %c0_i32_10 = arith.constant 0 : i32
    %12 = arith.cmpi eq, %arg1, %c0_i32_10 : i32
    %13 = arith.extui %12 : i1 to i32
    %c0_i32_11 = arith.constant 0 : i32
    %14 = arith.cmpi ne, %13, %c0_i32_11 : i32
    scf.if %14 {
      %c0_12 = arith.constant 0 : index
      %c0_13 = arith.constant 0 : index
      %15 = vector.load %arg11[%c0_12, %c0_13] : memref<2x8xf32, #tpu.memory_space<vmem>>, vector<2x8xf32>
      %c0_14 = arith.constant 0 : index
      %c0_15 = arith.constant 0 : index
      %16 = vector.load %arg4[%c0_14, %c0_15] : memref<1x8xf32, #tpu.memory_space<vmem>>, vector<1x8xf32>
      %17 = vector.broadcast %16 : vector<1x8xf32> to vector<2x8xf32>
      %18 = arith.addf %15, %17 : vector<2x8xf32>
      %cst_16 = arith.constant 0.000000e+00 : f32
      %19 = vector.broadcast %cst_16 : f32 to vector<2x8xf32>
      %20 = arith.maximumf %18, %19 : vector<2x8xf32>
      %c0_17 = arith.constant 0 : index
      %c0_18 = arith.constant 0 : index
      %21 = vector.load %arg5[%c0_17, %c0_18] : memref<8x2xf32, #tpu.memory_space<vmem>>, vector<8x2xf32>
      %cst_19 = arith.constant dense<0.000000e+00> : vector<2x2xf32>
      %22 = tpu.matmul %20, %21, %cst_19 {dimension_numbers = #tpu.dot_dimension_numbers<[1], [0], [0], [1], [0, 0, 1, 1], [], []>} : vector<2x8xf32>, vector<8x2xf32>, vector<2x2xf32> -> vector<2x2xf32>
      %c0_20 = arith.constant 0 : index
      %c0_21 = arith.constant 0 : index
      %23 = vector.load %arg6[%c0_20, %c0_21] : memref<1x2xf32, #tpu.memory_space<vmem>>, vector<1x2xf32>
      %24 = vector.broadcast %23 : vector<1x2xf32> to vector<2x2xf32>
      %25 = arith.addf %22, %24 : vector<2x2xf32>
      %cst_22 = arith.constant 0.000000e+00 : f32
      %26 = vector.broadcast %cst_22 : f32 to vector<2x2xf32>
      %27 = arith.maximumf %25, %26 : vector<2x2xf32>
      %c0_23 = arith.constant 0 : index
      %c0_24 = arith.constant 0 : index
      %28 = vector.load %arg8[%c0_23, %c0_24] : memref<2x8xf32, #tpu.memory_space<vmem>>, vector<2x8xf32>
      %cst_25 = arith.constant dense<0.000000e+00> : vector<2x8xf32>
      %29 = tpu.matmul %27, %28, %cst_25 {dimension_numbers = #tpu.dot_dimension_numbers<[1], [0], [0], [1], [0, 0, 1, 1], [], []>} : vector<2x2xf32>, vector<2x8xf32>, vector<2x8xf32> -> vector<2x8xf32>
      %c0_26 = arith.constant 0 : index
      %c0_27 = arith.constant 0 : index
      %30 = vector.load %arg9[%c0_26, %c0_27] : memref<1x8xf32, #tpu.memory_space<vmem>>, vector<1x8xf32>
      %31 = vector.broadcast %30 : vector<1x8xf32> to vector<2x8xf32>
      %32 = arith.addf %29, %31 : vector<2x8xf32>
      %c0_28 = arith.constant 0 : index
      %c0_29 = arith.constant 0 : index
      %c0_30 = arith.constant 0 : index
      %33 = vector.load %arg10[%c0_28, %c0_29, %c0_30] : memref<2x8x8xf32, #tpu.memory_space<vmem>>, vector<2x8x8xf32>
      %34 = vector.shape_cast %32 : vector<2x8xf32> to vector<2x8x1xf32>
      %35 = vector.broadcast %34 : vector<2x8x1xf32> to vector<2x8x8xf32>
      %36 = arith.addf %33, %35 : vector<2x8x8xf32>
      %cst_31 = arith.constant 0.000000e+00 : f32
      %37 = vector.broadcast %cst_31 : f32 to vector<2x8x8xf32>
      %38 = arith.maximumf %36, %37 : vector<2x8x8xf32>
      %c0_32 = arith.constant 0 : index
      %c0_33 = arith.constant 0 : index
      %c0_34 = arith.constant 0 : index
      %39 = vector.load %arg10[%c0_32, %c0_33, %c0_34] : memref<2x8x8xf32, #tpu.memory_space<vmem>>, vector<2x8x8xf32>
      tpu.vector_store %arg10[%c0_32, %c0_33, %c0_34], %38 {strides = array<i32>} : memref<2x8x8xf32, #tpu.memory_space<vmem>>, vector<2x8x8xf32>,
    } else {
    }
    return
  }
  func.func @transform_0(%arg0: i32, %arg1: i32) -> (i32, i32, i32) {
    %c0_i32 = arith.constant 0 : i32
    %c0_i32_0 = arith.constant 0 : i32
    return %arg0, %c0_i32, %arg1 : i32, i32, i32
  }
  func.func @transform_1(%arg0: i32, %arg1: i32) -> (i32, i32) {
    %c0_i32 = arith.constant 0 : i32
    %c0_i32_0 = arith.constant 0 : i32
    %c0_i32_1 = arith.constant 0 : i32
    return %c0_i32, %c0_i32_0 : i32, i32
  }
  func.func @transform_2(%arg0: i32, %arg1: i32) -> (i32, i32) {
    %c0_i32 = arith.constant 0 : i32
    %c0_i32_0 = arith.constant 0 : i32
    %c0_i32_1 = arith.constant 0 : i32
    return %c0_i32, %c0_i32_0 : i32, i32
  }
  func.func @transform_3(%arg0: i32, %arg1: i32) -> (i32, i32) {
    %c0_i32 = arith.constant 0 : i32
    %c0_i32_0 = arith.constant 0 : i32
    %c0_i32_1 = arith.constant 0 : i32
    return %c0_i32, %c0_i32_0 : i32, i32
  }
  func.func @transform_4(%arg0: i32, %arg1: i32) -> (i32, i32) {
    %c0_i32 = arith.constant 0 : i32
    %c0_i32_0 = arith.constant 0 : i32
    %c0_i32_1 = arith.constant 0 : i32
    return %c0_i32, %c0_i32_0 : i32, i32
  }
  func.func @transform_5(%arg0: i32, %arg1: i32) -> (i32, i32) {
    %c0_i32 = arith.constant 0 : i32
    %c0_i32_0 = arith.constant 0 : i32
    %c0_i32_1 = arith.constant 0 : i32
    return %c0_i32, %c0_i32_0 : i32, i32
  }
  func.func @transform_6(%arg0: i32, %arg1: i32) -> (i32, i32) {
    %c0_i32 = arith.constant 0 : i32
    %c0_i32_0 = arith.constant 0 : i32
    %c0_i32_1 = arith.constant 0 : i32
    return %c0_i32, %c0_i32_0 : i32, i32
  }
  func.func @transform_7(%arg0: i32, %arg1: i32) -> (i32, i32) {
    %c0_i32 = arith.constant 0 : i32
    %c0_i32_0 = arith.constant 0 : i32
    %c0_i32_1 = arith.constant 0 : i32
    return %c0_i32, %c0_i32_0 : i32, i32
  }
  func.func @transform_8(%arg0: i32, %arg1: i32) -> (i32, i32, i32) {
    %c0_i32 = arith.constant 0 : i32
    %c0_i32_0 = arith.constant 0 : i32
    %c0_i32_1 = arith.constant 0 : i32
    return %arg0, %c0_i32, %c0_i32_0 : i32, i32, i32
  }
}

</mosaic_0001>

<bundles_post_ra>
// kernel: tpu_custom_call.1
= control target key start
LH: loop header
LB: loop body
LE: loop exit
PB: predicated region body
PF: predicated region fallthrough
CT: control target
= control target key end

     0   :  { %vm43_vm0 = vcmask 1043456   ;;  %v677_v2 = vmov 0.0   ;;  %vm678_vm1 = vmmov 0   ;;  %vm39_vm2 = vcmask 31744   ;;  %s785_s0 = inlined_call_operand.vmem [shape: f32[2,4,16], index: 0, kind: input, shape index: {}]   ;;  %s786_s1 = inlined_call_operand.vmem [shape: f32[8,4], index: 1, kind: input, shape index: {}]   ;;  %s787_s2 = inlined_call_operand.vmem [shape: f32[1,8], index: 2, kind: input, shape index: {}]   ;;  %s788_s3 = inlined_call_operand.vmem [shape: f32[8,2], index: 3, kind: input, shape index: {}]   ;;  %s789_s4 = inlined_call_operand.vmem [shape: f32[1,2], index: 4, kind: input, shape index: {}]   ;;  %s790_s5 = inlined_call_operand.vmem [shape: f32[8,4], index: 5, kind: input, shape index: {}]   ;;  %s791_s6 = inlined_call_operand.vmem [shape: f32[2,8], index: 6, kind: input, shape index: {}]   ;;  %s792_s7 = inlined_call_operand.vmem [shape: f32[1,8], index: 7, kind: input, shape index: {}]   ;;  %s793_s8 = inlined_call_operand.hbm [shape: f32[2,8,8], index: 8, kind: output, shape index: {}]  }
   0x1   :  { %v37_v0 = vld [vmem:[%s785_s0] sm:$0xf]  ;;  %619 = vmatprep.subr.mxu0 %v677_v2  ;;  %621 = vmatprep.mubr.msk.f32.mxu0 %vm678_vm1, %v677_v2  ;;  %v38_v4 = vld [vmem:[%s785_s0 + $0x4] sm:$0xf] }
   0x2   :  { %v36_v1 = vld [vmem:[%s790_s5] sm:$0xff]  ;;  %620 = vmatpush3.msk.msra.mxu0 %vm43_vm0, %v37_v0  ;;  %624 = vmatprep.subr.mxu1 %v677_v2 }
   0x3   :  { %v193_v3 = vld [vmem:[%s785_s0] sm:$0xf] }
   0x4   :  { %13 = vsyncpa [#allocation4], 0  ;;  %622 = vmatmul.mubr.msk.f32.vlgmr.msra.gmra.mxu0 %vm39_vm2, %v36_v1  ;;  %629 = vmatprep.subr.mxu0 %v677_v2  ;;  %v195_v5 = vld [vmem:[%s786_s1] sm:$0xff]  ;;  %vm190_vm3 = vcmask 64512   ;;  %vm348_vm4 = vcmask 130048   ;;  %vm34_vm5 = vcmask 58368   ;;  %v357_v19 = vlaneseq }
   0x5   :  { %630 = vmatpush3.msk.msra.mxu0 %vm43_vm0, %v193_v3  ;;  %625 = vmatpush3.msk.msra.mxu1 %vm43_vm0, %v38_v4  ;;  %v194_v6 = vld [vmem:[%s785_s0 + $0x4] sm:$0xf]  ;;  %v679_v17 = vmov -inf   ;;  %vm367_vm6 = vcmask 1041409   ;;  %v601_v30 = vld [vmem:[%s787_s2] ss:$0 sm:$0xff] }
   0x6   :  { %626 = vmatprep.mubr.msk.f32.mxu1 %vm678_vm1, %v677_v2  ;;  %631 = vmatprep.mubr.msk.f32.mxu0 %vm678_vm1, %v677_v2  ;;  %35 = vst.msk [vmem:[#allocation2] sm:$0x3] %vm34_vm5, %v679_v17  ;;  %v386_v18 = vld [vmem:[%s788_s3] sm:$0xff]  ;;  %v358_v20 = vand.u32 127, %v357_v19  ;;  %v360_v21 = vshrl.u32 %v357_v19, 7  ;;  %vm481_vm7 = vcmask 1041408  }
   0x7   :  { %627 = vmatmul.mubr.msk.f32.vlgmr.msra.gmra.mxu1 %vm39_vm2, %v36_v1  ;;  %634 = vmatprep.subr.mxu1 %v677_v2  ;;  %v469_v34 = vld [vmem:[%s791_s6] sm:$0x3]  ;;  %vm477_vm8 = vcmask 15360  }
   0x8   :  { %632 = vmatmul.mubr.msk.f32.vlgmr.msra.gmra.mxu0 %vm39_vm2, %v195_v5  ;;  %635 = vmatpush3.msk.msra.mxu1 %vm43_vm0, %v194_v6  ;;  %v361_v23 = vsub.s32 %v358_v20, %v360_v21  ;;  %v602_v35 = vld [vmem:[%s789_s4] ss:$0 sm:$0xff]  ;;  %v559_v41 = vsub.s32 0, %v360_v21  ;;  %v566_v46 = vsub.s32 1, %v360_v21  ;;  %s680_s4 = smov [#allocation3]  }
   0x9   :  { %636 = vmatprep.mubr.msk.f32.mxu1 %vm678_vm1, %v677_v2  ;;  %639 = vmatprep.subr.mxu0 %v677_v2  ;;  %v604_v40 = vld [vmem:[%s792_s7] ss:$0 sm:$0xff]  ;;  %s582_s6 = sshll.u32 %s680_s4, 4  ;;  %s583_s6 = int_to_ptr.vmem [resolvable:$true] %s582_s6 }
   0xa   :  { %641 = vmatprep.mubr.msk.f32.mxu0 %vm678_vm1, %v677_v2  ;;  %644 = vmatprep.subr.mxu1 %v677_v2  ;;  %s655_s7 = scalar_lea.vmem %s583_s6, 256  ;;  %p660_p1 = scmp.lt.s32.totalorder %s583_s6, %s583_s6 }
   0xb   :  { %637 = vmatmul.mubr.msk.f32.vlgmr.msra.gmra.mxu1 %vm39_vm2, %v195_v5  ;;  %640 = vmatpush3.msra.mxu0 %v386_v18  ;;  %p656_p0 = scmp.ne.s32.totalorder %s583_s6, %s655_s7  ;;  %p661_p2 = scmp.lt.s32.totalorder %s655_s7, %s655_s7 }
   0xc   :  { %646 = vmatprep.mubr.msk.f32.mxu1 %vm678_vm1, %v677_v2  ;;  %645 = vmatpush3.msk.msra.mxu1 %vm481_vm7, %v469_v34 }
   0xd   :  { %v347_v26 = vld [vmem:[#allocation2] sm:$0x3]  ;;  %p662_p3 = por %p661_p2, %p660_p1 }
   0xf   :  { %p663_p4 = pnand %p662_p3, %p656_p0 }
  0xc4   :  { %v113_v7 = vpop.f32.mrf.mxu0 }
  0xc5   :  { %191 = vst.msk [vmem:[#allocation3] sm:$0xff] %vm190_vm3, %v113_v7 }
  0xc6   :  { %v623_v8 = vpop.f32.mrf.mxu0 }
  0xc7   :  { %v186_v9 = vpop.f32.mrf.mxu1 }
  0xc8   :  { %192 = vst.msk [vmem:[#allocation3 + $0x8] sm:$0xff] %vm190_vm3, %v186_v9  ;;  %v270_v10 = vpop.f32.mrf.mxu0 }
  0xc9   :  { %v628_v11 = vpop.f32.mrf.mxu1  ;;  %v349_v12 = vsel %vm348_vm4, %v270_v10, -inf }
  0xca   :  { %350 = vmax.xlane.f32.xlu0 %v349_v12  ;;  %v633_v13 = vpop.f32.mrf.mxu0 }
  0xcb   :  { %v343_v14 = vpop.f32.mrf.mxu1 }
  0xcc   :  { %v352_v15 = vsel %vm348_vm4, %v343_v14, -inf  ;;  %v555_v48 = vld [vmem:[#allocation3] sm:$0xff] }
  0xcd   :  { %v638_v16 = vpop.f32.mrf.mxu1 }
  0xce   :  { %353 = vmax.xlane.f32.xlu0 %v352_v15 }
  0xcf   :  { %v556_v52 = vld [vmem:[#allocation3 + $0x8] sm:$0xff] }
 0x153   :  { %v351_v22 = vpop.xlane.xlu0 %350 }
 0x154   :  { %v362_v25 = vrot.slane %v351_v22, %v361_v23 }
 0x157   :  { %v354_v24 = vpop.xlane.xlu0 %353 }
 0x158   :  { %v366_v27 = vrot.slane %v354_v24, %v361_v23 }
 0x15a   :  { %v368_v28 = vsel %vm367_vm6, %v366_v27, %v362_v25 }
 0x15b   :  { %v370_v29 = vmax.f32 %v347_v26, %v368_v28 }
 0x15d   :  { %372 = vst.msk [vmem:[#allocation2] sm:$0x3] %vm34_vm5, %v370_v29 }
 0x164   :  { %v376_v31 = vld [vmem:[#allocation2] sm:$0x3] }
 0x165   :  { %v384_v32 = vadd.f32 %v601_v30, %v376_v31 }
 0x167   :  { %v385_v33 = vmax.f32 %v384_v32, 0.0 }
 0x169   :  { %642 = vmatmul.mubr.msk.f32.vlgmr.msra.gmra.mxu0 %vm190_vm3, %v385_v33 }
 0x229   :  { %v464_v36 = vpop.f32.mrf.mxu0 }
 0x22a   :  { %v465_v37 = vadd.f32 %v602_v35, %v464_v36 }
 0x22b   :  { %v643_v38 = vpop.f32.mrf.mxu0 }
 0x22c   :  { %v468_v39 = vmax.f32 %v465_v37, 0.0 }
 0x22e   :  { %647 = vmatmul.mubr.msk.f32.vlgmr.msra.gmra.mxu1 %vm477_vm8, %v468_v39 }
 0x2ee   :  { %v551_v42 = vpop.f32.mrf.mxu1 }
 0x2ef   :  { %v552_v43 = vadd.f32 %v604_v40, %v551_v42 }
 0x2f0   :  { %v648_v44 = vpop.f32.mrf.mxu1 }
 0x2f1   :  { %v560_v45 = vrot.slane %v552_v43, %v559_v41  ;;  %v567_v47 = vrot.slane %v552_v43, %v566_v46 }
 0x2f3   :  { %562 = vbcast.lane.b32.xlu1 %v560_v45, 256 }
 0x2f7   :  { %569 = vbcast.lane.b32.xlu1 %v567_v47, 256 }
 0x365   :  { %v563_v49 = vpop.permute.xlu1 %562 }
 0x366   :  { %v571_v50 = vadd.f32 %v563_v49, %v555_v48 }
 0x368   :  { %v573_v51 = vmax.f32 %v571_v50, 0.0 }
 0x369   :  { %v570_v53 = vpop.permute.xlu1 %569 }
 0x36a   :  { %575 = vst.msk [vmem:[#allocation3] sm:$0xff] %vm190_vm3, %v573_v51  ;;  %v572_v54 = vadd.f32 %v570_v53, %v556_v52 }
 0x36c   :  { %v574_v55 = vmax.f32 %v572_v54, 0.0 }
 0x36e   :  { %576 = vst.msk [vmem:[#allocation3 + $0x8] sm:$0xff] %vm190_vm3, %v574_v55 }
 0x36f   :  { %666 = shalt.err (!%p663_p4)
}
 0x370   :  { %s681_s22 = smov 128   ;;  %s682_s23 = smov 8  }
 0x371   :  { %588 = dma.vmem_to_hbm [thread:$0]  %s583_s6, 256, %s793_s8, [#allocation4], %s681_s22, %s681_s22, %s682_s23  }
 0x372   :  { %675 = dma.done.wait [#allocation4], 256  }
 0x373   :  { %676 = vsyncadd [#allocation4], 4294967040 }
 0x374   :  { %592 = vsyncpa [#allocation4], 1 }

</bundles_post_ra>
